<compile_context>
chip_gen: v7x
topology: tpu7x:2x2x1
jax: 0.10.0
libtpu: 0.0.40
codegen_flags: <defaults>
</compile_context>

<pallas_src>
import functools

import jax
import jax.numpy as jnp
import numpy as np
from jax.experimental import pallas as pl
from jax.experimental.pallas import tpu as pltpu


def _round_up(x, m):
    return ((x + m - 1) // m) * m


# ----------------------------------------------------------------------------
# Kernel 1: fused Q/K/V projection  (x @ [Wq|Wk|Wv|0-pad] + [bq|bk|bv|0-pad])
# ----------------------------------------------------------------------------
def qkv_kernel(x_ref, w_ref, b_ref, o_ref):
    o_ref[...] = (
        jnp.dot(x_ref[...], w_ref[...], preferred_element_type=jnp.float32)
        + b_ref[...]
    )


def qkv_project(x, w_qkv, b_qkv, tn):
    n, cin = x.shape
    ctot = w_qkv.shape[1]          # already padded to a multiple of 128 lanes
    return pl.pallas_call(
        qkv_kernel,
        out_shape=jax.ShapeDtypeStruct((n, ctot), jnp.float32),
        grid=(n // tn,),
        in_specs=[
            pl.BlockSpec((tn, cin), lambda i: (i, 0)),
            pl.BlockSpec((cin, ctot), lambda i: (0, 0)),
            pl.BlockSpec((1, ctot), lambda i: (0, 0)),
        ],
        out_specs=pl.BlockSpec((tn, ctot), lambda i: (i, 0)),
        compiler_params=pltpu.CompilerParams(
            dimension_semantics=("parallel",),
            vmem_limit_bytes=64 * 1024 * 1024,
        ),
    )(x, w_qkv, b_qkv)


# ----------------------------------------------------------------------------
# Kernel 2: main point-transformer attention kernel (per tile of points)
#
# Params are pre-folded/packed in the wrapper:
#   wp1b : (4, 3)        rows 0..2 = wp1 * bn_p.scale, row 3 = folded bias
#   wp2  : (3, C)        second linear_p weight
#   cvec : (3, C)        row 0 = bp2, row 1 = bn_w1.scale, row 2 = bn_w1.shift
#   ww1f : (C, C/s)      ww1 * bn_w2.scale (BN folded)
#   svec : (2, C/s)      row 0 = folded bw1, row 1 = bw2
#   ww2  : (C/s, C/s)
# ----------------------------------------------------------------------------
def pt_kernel(
    xq_ref, xkg_ref, xvg_ref, pr_ref,
    wp1b_ref, wp2_ref, cvec_ref, ww1_ref, svec_ref, ww2_ref,
    out_ref, *, share_planes,
):
    tn, ns, _ = pr_ref.shape
    c = xvg_ref.shape[-1]            # out_planes (== mid_planes here)
    cs = c // share_planes

    pr = pr_ref[...]                 # (tn, ns, 3)
    wp1b = wp1b_ref[...]             # (4, 3)
    wp2 = wp2_ref[...]               # (3, c)
    cvec = cvec_ref[...]             # (3, c)
    svec = svec_ref[...]             # (2, cs)

    # ---- linear_p layer 1: Linear(3,3)+BN folded, unrolled K=3 FMAs (VPU) ----
    h = (pr[:, :, 0:1] * wp1b[0][None, None, :]
         + pr[:, :, 1:2] * wp1b[1][None, None, :]
         + pr[:, :, 2:3] * wp1b[2][None, None, :]
         + wp1b[3][None, None, :])
    h = jnp.maximum(h, 0.0)
    # ---- linear_p layer 2: Linear(3, C), unrolled K=3 FMAs (VPU) ----
    p_feat = (h[:, :, 0:1] * wp2[0][None, None, :]
              + h[:, :, 1:2] * wp2[1][None, None, :]
              + h[:, :, 2:3] * wp2[2][None, None, :]
              + cvec[0][None, None, :])                       # (tn, ns, c)

    # ---- w = x_k - x_q + p_r  (out_planes // mid_planes == 1 -> .sum(2) is identity)
    w = xkg_ref[...] - xq_ref[...][:, None, :] + p_feat
    # BN(mid) affine + ReLU
    w = jnp.maximum(w * cvec[1][None, None, :] + cvec[2][None, None, :], 0.0)

    # ---- linear_w: Linear(mid, c/s) (BN folded) -> ReLU -> Linear(c/s, c/s) ----
    w2 = (jnp.dot(w.reshape(tn * ns, c), ww1_ref[...],
                  preferred_element_type=jnp.float32) + svec[0][None, :])
    w2 = jnp.maximum(w2, 0.0)
    w2 = (jnp.dot(w2, ww2_ref[...], preferred_element_type=jnp.float32)
          + svec[1][None, :]).reshape(tn, ns, cs)

    # ---- softmax over the nsample (neighbor) axis; divide on the EUP ----
    m = jnp.max(w2, axis=1, keepdims=True)
    e = jnp.exp(w2 - m)
    attn = e * pl.reciprocal(jnp.sum(e, axis=1, keepdims=True), approx=True)

    # ---- weighted aggregation: ((x_v + p_r).view(n,ns,s,c/s) * w).sum(1) ----
    # channel j uses attention column j % cs -> replicate via per-group lane masks
    # (pure VPU mul/add, no lane concatenation).
    lane = jax.lax.broadcasted_iota(jnp.int32, (1, 1, c), 2)
    grp = lane % cs
    attn_full = attn[:, :, 0:1] * (grp == 0).astype(jnp.float32)
    for ci in range(1, cs):
        attn_full = attn_full + attn[:, :, ci:ci + 1] * (grp == ci).astype(jnp.float32)

    out_ref[...] = jnp.sum((xvg_ref[...] + p_feat) * attn_full, axis=1)


# ----------------------------------------------------------------------------
# Wrapper: full forward pass (single batch: offsets o == [n])
# ----------------------------------------------------------------------------
def point_transformer_layer(p, x, params, *, share_planes=8, nsample=16, tn=256):
    n = x.shape[0]
    mid = params["wq"].shape[1]
    out_p = params["wv"].shape[1]
    cs = out_p // share_planes
    eps = 1e-5

    # ---- tile size: multiple of 8 sublanes, clamped to (padded) n; pad remainder ----
    tn_eff = max(8, (min(tn, _round_up(n, 8)) // 8) * 8)
    n_pad = _round_up(n, tn_eff)

    # ---- fused QKV projection (Pallas), output columns padded to 128 lanes ----
    ctot = 2 * mid + out_p
    ctot_pad = _round_up(ctot, 128)
    w_qkv = jnp.concatenate([params["wq"], params["wk"], params["wv"]], axis=1)
    w_qkv = jnp.pad(w_qkv, ((0, 0), (0, ctot_pad - ctot)))
    b_qkv = jnp.pad(
        jnp.concatenate([params["bq"], params["bk"], params["bv"]]),
        (0, ctot_pad - ctot))[None, :]
    x_pad = jnp.pad(x, ((0, n_pad - n), (0, 0)))
    qkv = qkv_project(x_pad, w_qkv, b_qkv, tn_eff)
    x_q = qkv[:, :mid]                         # (n_pad, mid) -- padded rows discarded later
    x_k = qkv[:n, mid:2 * mid]
    x_v = qkv[:n, 2 * mid:2 * mid + out_p]

    # ---- pointops.queryandgroup: KNN (includes self) + gather (plain-JAX glue) ----
    # matmul-identity distances (MXU) + top_k instead of (n,n,3) broadcast + argsort
    pn2 = jnp.sum(p * p, axis=-1)
    d2 = pn2[:, None] + pn2[None, :] - 2.0 * (p @ p.T)
    _, idx = jax.lax.top_k(-d2, nsample)       # (n, nsample) nearest neighbors
    p_r = p[idx] - p[:, None, :]               # use_xyz=True prefix, relative coords
    x_kg = x_k[idx]                            # (n, nsample, mid)
    x_vg = x_v[idx]                            # (n, nsample, out_p)

    pad3 = ((0, n_pad - n), (0, 0), (0, 0))
    p_r_p = jnp.pad(p_r, pad3)
    x_kg_p = jnp.pad(x_kg, pad3)
    x_vg_p = jnp.pad(x_vg, pad3)

    # ---- fold eval-mode BatchNorm1d into neighbouring Linears / one affine ----
    def bn_fold(g, b, m, v):
        s = g / jnp.sqrt(v + eps)
        return s, b - m * s

    sp, tp = bn_fold(params["bnp_g"], params["bnp_b"], params["bnp_m"], params["bnp_v"])
    s1, t1 = bn_fold(params["bnw1_g"], params["bnw1_b"], params["bnw1_m"], params["bnw1_v"])
    s2, t2 = bn_fold(params["bnw2_g"], params["bnw2_b"], params["bnw2_m"], params["bnw2_v"])

    wp1b = jnp.concatenate(                         # Linear(3,3) with BN(3) folded + bias row
        [params["wp1"] * sp[None, :], (params["bp1"] * sp + tp)[None, :]], axis=0)  # (4,3)
    wp2 = params["wp2"]                             # (3, out_p)
    cvec = jnp.stack([params["bp2"], s1, t1], axis=0)            # (3, out_p)
    ww1f = params["ww1"] * s2[None, :]              # Linear(mid, cs) with BN(cs) folded
    svec = jnp.stack([params["bw1"] * s2 + t2, params["bw2"]], axis=0)  # (2, cs)
    ww2 = params["ww2"]

    full = lambda a: pl.BlockSpec(a.shape, lambda i: (0,) * a.ndim)

    out = pl.pallas_call(
        functools.partial(pt_kernel, share_planes=share_planes),
        out_shape=jax.ShapeDtypeStruct((n_pad, out_p), jnp.float32),
        grid=(n_pad // tn_eff,),
        in_specs=[
            pl.BlockSpec((tn_eff, mid), lambda i: (i, 0)),
            pl.BlockSpec((tn_eff, nsample, mid), lambda i: (i, 0, 0)),
            pl.BlockSpec((tn_eff, nsample, out_p), lambda i: (i, 0, 0)),
            pl.BlockSpec((tn_eff, nsample, 3), lambda i: (i, 0, 0)),
            full(wp1b), full(wp2), full(cvec), full(ww1f), full(svec), full(ww2),
        ],
        out_specs=pl.BlockSpec((tn_eff, out_p), lambda i: (i, 0)),
        compiler_params=pltpu.CompilerParams(
            dimension_semantics=("parallel",),
            vmem_limit_bytes=64 * 1024 * 1024,
        ),
    )(x_q, x_kg_p, x_vg_p, p_r_p, wp1b, wp2, cvec, ww1f, svec, ww2)[:n]

    # ---- pure-JAX reference (unfolded BN, f32 matmuls) for a correctness check ----
    with jax.default_matmul_precision("float32"):
        h = jnp.maximum((p_r @ params["wp1"] + params["bp1"]) * sp + tp, 0.0)
        pf = h @ params["wp2"] + params["bp2"]
        w = x_kg - x_q[:n, None, :] + pf
        w = jnp.maximum(w * s1 + t1, 0.0)
        w = w @ params["ww1"] + params["bw1"]
        w = jnp.maximum(w * s2 + t2, 0.0)
        w = w @ params["ww2"] + params["bw2"]
        w = jax.nn.softmax(w, axis=1)
        v = (x_vg + pf).reshape(n, nsample, share_planes, cs)
        ref = jnp.sum(v * w[:, :, None, :], axis=1).reshape(n, out_p)

    return out, ref


# ----------------------------------------------------------------------------
def make_params(key, in_planes, out_planes, share_planes):
    mid = out_planes
    cs = out_planes // share_planes
    ks = jax.random.split(key, 24)
    g = lambda k, sh, s=0.1: (s * jax.random.normal(k, sh)).astype(jnp.float32)
    return {
        "wq": g(ks[0], (in_planes, mid)), "bq": g(ks[1], (mid,)),
        "wk": g(ks[2], (in_planes, mid)), "bk": g(ks[3], (mid,)),
        "wv": g(ks[4], (in_planes, out_planes)), "bv": g(ks[5], (out_planes,)),
        "wp1": g(ks[6], (3, 3)), "bp1": g(ks[7], (3,)),
        "bnp_g": 1.0 + g(ks[8], (3,)), "bnp_b": g(ks[9], (3,)),
        "bnp_m": g(ks[10], (3,)), "bnp_v": 1.0 + jnp.abs(g(ks[11], (3,))),
        "wp2": g(ks[12], (3, out_planes)), "bp2": g(ks[13], (out_planes,)),
        "bnw1_g": 1.0 + g(ks[14], (mid,)), "bnw1_b": g(ks[15], (mid,)),
        "bnw1_m": g(ks[16], (mid,)), "bnw1_v": 1.0 + jnp.abs(g(ks[17], (mid,))),
        "ww1": g(ks[18], (mid, cs)), "bw1": g(ks[19], (cs,)),
        "bnw2_g": 1.0 + g(ks[20], (cs,)), "bnw2_b": g(ks[21], (cs,)),
        "bnw2_m": g(ks[22], (cs,)), "bnw2_v": 1.0 + jnp.abs(g(ks[23], (cs,))),
        "ww2": g(ks[0], (cs, cs)), "bw2": g(ks[1], (cs,)),
    }


if __name__ == "__main__":
    n, in_planes, out_planes, share_planes, nsample = 64, 32, 32, 8, 16
    key = jax.random.PRNGKey(0)
    kp, kx, kw = jax.random.split(key, 3)
    p = jax.random.normal(kp, (n, 3), dtype=jnp.float32)
    x = jax.random.normal(kx, (n, in_planes), dtype=jnp.float32)
    params = make_params(kw, in_planes, out_planes, share_planes)

    out, ref = point_transformer_layer(
        p, x, params, share_planes=share_planes, nsample=nsample, tn=256
    )
    out = jax.block_until_ready(out)
    np.testing.assert_allclose(np.asarray(out), np.asarray(ref), rtol=5e-3, atol=1e-3)
    assert out.shape == (n, out_planes)
    print("KERNEL_OK")
</pallas_src>

<mosaic_0001>
module attributes {stable_mosaic.version = 11 : i64} {
  func.func @qkv_kernel(%arg0: i32, %arg1: memref<64x32xf32, #tpu.memory_space<vmem>>, %arg2: memref<32x128xf32, #tpu.memory_space<vmem>>, %arg3: memref<1x128xf32, #tpu.memory_space<vmem>>, %arg4: memref<64x128xf32, #tpu.memory_space<vmem>>) attributes {dimension_semantics = [#tpu.dimension_semantics<parallel>], iteration_bounds = array<i64: 1>, scalar_prefetch = 0 : i64, scratch_operands = 0 : i64, tpu.core_type = #tpu.core_type<tc>, window_params = [{transform_indices = @transform_0, window_bounds = array<i64: 64, 32>}, {pipeline_mode = #tpu.pipeline_mode<synchronous>, transform_indices = @transform_1, window_bounds = array<i64: 32, 128>}, {pipeline_mode = #tpu.pipeline_mode<synchronous>, transform_indices = @transform_2, window_bounds = array<i64: 1, 128>}, {transform_indices = @transform_3, window_bounds = array<i64: 64, 128>}]} {
    %c0 = arith.constant 0 : index
    %c0_0 = arith.constant 0 : index
    %0 = vector.load %arg1[%c0, %c0_0] : memref<64x32xf32, #tpu.memory_space<vmem>>, vector<64x32xf32>
    %c0_1 = arith.constant 0 : index
    %c0_2 = arith.constant 0 : index
    %1 = vector.load %arg2[%c0_1, %c0_2] : memref<32x128xf32, #tpu.memory_space<vmem>>, vector<32x128xf32>
    %cst = arith.constant dense<0.000000e+00> : vector<64x128xf32>
    %2 = tpu.matmul %0, %1, %cst {dimension_numbers = #tpu.dot_dimension_numbers<[1], [0], [0], [1], [0, 0, 1, 1], [], []>} : vector<64x32xf32>, vector<32x128xf32>, vector<64x128xf32> -> vector<64x128xf32>
    %c0_3 = arith.constant 0 : index
    %c0_4 = arith.constant 0 : index
    %3 = vector.load %arg3[%c0_3, %c0_4] : memref<1x128xf32, #tpu.memory_space<vmem>>, vector<1x128xf32>
    %4 = vector.broadcast %3 : vector<1x128xf32> to vector<64x128xf32>
    %5 = arith.addf %2, %4 : vector<64x128xf32>
    %c0_5 = arith.constant 0 : index
    %c0_6 = arith.constant 0 : index
    %6 = vector.load %arg4[%c0_5, %c0_6] : memref<64x128xf32, #tpu.memory_space<vmem>>, vector<64x128xf32>
    tpu.vector_store %arg4[%c0_5, %c0_6], %5 {strides = array<i32>} : memref<64x128xf32, #tpu.memory_space<vmem>>, vector<64x128xf32>,
    return
  }
  func.func @transform_0(%arg0: i32) -> (i32, i32) {
    %c0_i32 = arith.constant 0 : i32
    %c0_i32_0 = arith.constant 0 : i32
    return %arg0, %c0_i32 : i32, i32
  }
  func.func @transform_1(%arg0: i32) -> (i32, i32) {
    %c0_i32 = arith.constant 0 : i32
    %c0_i32_0 = arith.constant 0 : i32
    %c0_i32_1 = arith.constant 0 : i32
    return %c0_i32, %c0_i32_0 : i32, i32
  }
  func.func @transform_2(%arg0: i32) -> (i32, i32) {
    %c0_i32 = arith.constant 0 : i32
    %c0_i32_0 = arith.constant 0 : i32
    %c0_i32_1 = arith.constant 0 : i32
    return %c0_i32, %c0_i32_0 : i32, i32
  }
  func.func @transform_3(%arg0: i32) -> (i32, i32) {
    %c0_i32 = arith.constant 0 : i32
    %c0_i32_0 = arith.constant 0 : i32
    return %arg0, %c0_i32 : i32, i32
  }
}

</mosaic_0001>

<bundles_post_ra>
// kernel: tpu_custom_call.1
= control target key start
LH: loop header
LB: loop body
LE: loop exit
PB: predicated region body
PF: predicated region fallthrough
CT: control target
= control target key end

     0   :  { %8 = vsyncpa [#allocation3], 0  ;;  %s480_s0 = inlined_call_operand.hbm [shape: f32[64,32], index: 0, kind: input, shape index: {}]   ;;  %s481_s1 = inlined_call_operand.hbm [shape: f32[32,128], index: 1, kind: input, shape index: {}]   ;;  %s482_s2 = inlined_call_operand.hbm [shape: f32[1,128], index: 2, kind: input, shape index: {}]   ;;  %s483_s3 = inlined_call_operand.hbm [shape: f32[64,128], index: 3, kind: output, shape index: {}]  }
   0x1   :  { %9 = vsyncpa [#allocation6], 0 }
   0x2   :  { %10 = vsyncpa [#allocation4], 0  ;;  %s382_s12 = smov [#allocation5]   ;;  %s383_s14 = smov [#allocation2]  }
   0x3   :  { %s28_s13 = sshll.u32 %s382_s12, 4  ;;  %s16_s15 = sshll.u32 %s383_s14, 4  ;;  %s29_s13 = int_to_ptr.vmem [resolvable:$true] %s28_s13  ;;  %s408_s15 = int_to_ptr.vmem [resolvable:$true] %s16_s15 }
   0x4   :  { %s288_s18 = scalar_lea.hbm %s481_s1, 512 }
   0x5   :  { %p289_p0 = scmp.ne.s32.totalorder %s481_s1, %s288_s18  ;;  %p292_p1 = scmp.lt.u32.totalorder %s288_s18, %s481_s1 }
   0x7   :  { %p294_p2 = pnand %p292_p1, %p289_p0 }
   0x9   :  { %297 = shalt.err (!%p294_p2)
}
   0xa   :  { %s298_s23 = scalar_lea.vmem %s29_s13, 512  ;;  %p303_p4 = scmp.lt.s32.totalorder %s29_s13, %s29_s13 }
   0xb   :  { %p299_p3 = scmp.ne.s32.totalorder %s29_s13, %s298_s23  ;;  %p304_p5 = scmp.lt.s32.totalorder %s298_s23, %s298_s23 }
   0xd   :  { %p305_p6 = por %p304_p5, %p303_p4 }
   0xf   :  { %p306_p7 = pnand %p305_p6, %p299_p3 }
  0x11   :  { %309 = shalt.err (!%p306_p7)
}
  0x12   :  { %s384_s24 = smov 128   ;;  %s385_s25 = smov 8  }
  0x13   :  { %34 = dma.hbm_to_vmem [thread:$0]  %s481_s1, 512, %s29_s13, [#allocation6], %s384_s24, %s384_s24, %s385_s25  }
  0x14   :  { %s310_s30 = scalar_lea.hbm %s480_s0, 1024 }
  0x15   :  { %p311_p8 = scmp.ne.s32.totalorder %s480_s0, %s310_s30  ;;  %p314_p9 = scmp.lt.u32.totalorder %s310_s30, %s480_s0 }
  0x17   :  { %p316_p10 = pnand %p314_p9, %p311_p8 }
  0x19   :  { %319 = shalt.err (!%p316_p10)
}
  0x1a   :  { %s320_s8 = scalar_lea.vmem %s408_s15, 1024  ;;  %p325_p12 = scmp.lt.s32.totalorder %s408_s15, %s408_s15 }
  0x1b   :  { %p321_p11 = scmp.ne.s32.totalorder %s408_s15, %s320_s8  ;;  %p326_p13 = scmp.lt.s32.totalorder %s320_s8, %s320_s8 }
  0x1d   :  { %p327_p0 = por %p326_p13, %p325_p12 }
  0x1f   :  { %p328_p1 = pnand %p327_p0, %p321_p11 }
  0x21   :  { %331 = shalt.err (!%p328_p1)
}
  0x22   :  { %22 = dma.hbm_to_vmem [thread:$0]  %s480_s0, 1024, %s408_s15, [#allocation3], %s384_s24, %s384_s24, %s385_s25  }
  0x23   :  { %s386_s10 = smov [#allocation7]   ;;  %s332_s14 = scalar_lea.hbm %s482_s2, 16 }
  0x24   :  { %s41_s11 = sshll.u32 %s386_s10, 4  ;;  %p333_p2 = scmp.ne.s32.totalorder %s482_s2, %s332_s14  ;;  %s42_s11 = int_to_ptr.vmem [resolvable:$true] %s41_s11 }
  0x25   :  { %p336_p3 = scmp.lt.u32.totalorder %s332_s14, %s482_s2 }
  0x27   :  { %p338_p4 = pnand %p336_p3, %p333_p2 }
  0x29   :  { %341 = shalt.err (!%p338_p4)
}
  0x2a   :  { %s342_s20 = scalar_lea.vmem %s42_s11, 16  ;;  %s346_s0 = scalar_lea.vmem %s42_s11, 32 }
  0x2b   :  { %p343_p5 = scmp.ne.s32.totalorder %s42_s11, %s342_s20  ;;  %p347_p6 = scmp.lt.s32.totalorder %s42_s11, %s42_s11 }
  0x2c   :  { %p348_p7 = scmp.lt.s32.totalorder %s346_s0, %s342_s20 }
  0x2e   :  { %p349_p8 = por %p348_p7, %p347_p6 }
  0x30   :  { %p350_p9 = pnand %p349_p8, %p343_p5 }
  0x32   :  { %353 = shalt.err (!%p350_p9)
}
  0x33   :  { %44 = dma.hbm_to_vmem [thread:$0]  %s482_s2, 16, %s42_s11, [#allocation6]  }
  0x34   :  { %376 = dma.done.wait [#allocation3], 1024  }
  0x35   :  { %377 = vsyncadd [#allocation3], 4294966272 }
  0x36   :  { %378 = dma.done.wait [#allocation6], 528  }
  0x37   :  { %379 = vsyncadd [#allocation6], 4294966768  ;;  %vm73_vm0 = vcmask 261120   ;;  %v62_v0 = vld [vmem:[#allocation5] sm:$0xff]  ;;  %v63_v1 = vld [vmem:[#allocation5 + $0x8] sm:$0xff]  ;;  %s387_s2 = smov [#allocation8]  }
  0x38   :  { %v64_v2 = vld [vmem:[#allocation5 + $0x10] sm:$0xff]  ;;  %v270_v3 = vpack.c.bf16 %v63_v1, %v62_v0  ;;  %v65_v4 = vld [vmem:[#allocation5 + $0x18] sm:$0xff]  ;;  %v54_v5 = vld [vmem:[#allocation2] sm:$0xff]  ;;  %s216_s22 = sshll.u32 %s387_s2, 4  ;;  %s217_s22 = int_to_ptr.vmem [resolvable:$true] %s216_s22 }
  0x39   :  { %v58_v6 = vld [vmem:[#allocation2 + $0x20] sm:$0xff]  ;;  %v274_v7 = vpack.c.bf16 %v65_v4, %v64_v2  ;;  %258 = vmatprep.mubr.msk.f32.mxu0 %vm73_vm0, %v54_v5  ;;  %v55_v8 = vld [vmem:[#allocation2 + $0x8] sm:$0xff]  ;;  %v56_v10 = vld [vmem:[#allocation2 + $0x10] sm:$0xff]  ;;  %s354_s23 = scalar_lea.vmem %s217_s22, 1024  ;;  %p359_p11 = scmp.lt.s32.totalorder %s217_s22, %s217_s22 }
  0x3a   :  { %264 = vmatprep.mubr.msk.f32.mxu1 %vm73_vm0, %v58_v6  ;;  %271 = vmatprep.subr.bf16.mxu0 %v270_v3  ;;  %v59_v9 = vld [vmem:[#allocation2 + $0x28] sm:$0xff]  ;;  %v60_v11 = vld [vmem:[#allocation2 + $0x30] sm:$0xff]  ;;  %v57_v12 = vld [vmem:[#allocation2 + $0x18] sm:$0xff]  ;;  %p355_p10 = scmp.ne.s32.totalorder %s217_s22, %s354_s23  ;;  %p360_p12 = scmp.lt.s32.totalorder %s354_s23, %s354_s23 }
  0x3b   :  { %278 = vmatprep.subr.bf16.mxu1 %v270_v3  ;;  %273 = vmatpush3.bf16.msra.mxu0 %v270_v3  ;;  %v61_v13 = vld [vmem:[#allocation2 + $0x38] sm:$0xff]  ;;  %v229_v14 = vld [vmem:[#allocation7] ss:$0 sm:$0xff] }
  0x3c   :  { %280 = vmatpush3.bf16.msra.mxu1 %v270_v3  ;;  %275 = vmatprep.subr.bf16.mxu0 %v274_v7  ;;  %p361_p13 = por %p360_p12, %p359_p11 }
  0x3d   :  { %279 = vmatprep.subr.bf16.mxu1 %v274_v7 }
  0x3e   :  { %p362_p0 = pnand %p361_p13, %p355_p10 }
  0x3f   :  { %277 = vmatpush3.bf16.msra.mxu0 %v274_v7 }
  0x40   :  { %281 = vmatpush3.bf16.msra.mxu1 %v274_v7 }
  0x42   :  { %259 = vmatmul.mubr.msk.f32.vlgmr.msra.gmra.mrb[0].mxu0 %vm73_vm0, %v55_v8 }
  0x43   :  { %265 = vmatmul.mubr.msk.f32.vlgmr.msra.gmra.mrb[0].mxu1 %vm73_vm0, %v59_v9  ;;  %261 = vmatprep.mubr.msk.f32.mxu0 %vm73_vm0, %v56_v10 }
  0x44   :  { %267 = vmatprep.mubr.msk.f32.mxu1 %vm73_vm0, %v60_v11 }
  0x46   :  { %262 = vmatmul.mubr.msk.f32.gmra.mrb[2].mxu0 %vm73_vm0, %v57_v12 }
  0x47   :  { %268 = vmatmul.mubr.msk.f32.gmra.mrb[2].mxu1 %vm73_vm0, %v61_v13 }
 0x115   :  { %v260_v15 = vpop.f32.mrb[0].mxu0 }
 0x116   :  { %v266_v16 = vpop.f32.mrb[0].mxu1  ;;  %v170_v17 = vadd.f32 %v260_v15, %v229_v14  ;;  %v164_v19 = vpop.f32.mrb[1].mxu0 }
 0x117   :  { %v190_v18 = vadd.f32 %v266_v16, %v229_v14  ;;  %v184_v20 = vpop.f32.mrb[1].mxu1  ;;  %v165_v21 = vadd.f32 %v229_v14, %v164_v19 }
 0x118   :  { %v185_v22 = vadd.f32 %v229_v14, %v184_v20  ;;  %204 = vst [vmem:[#allocation8 + $0x8] sm:$0xff] %v170_v17 }
 0x119   :  { %208 = vst [vmem:[#allocation8 + $0x28] sm:$0xff] %v190_v18  ;;  %203 = vst [vmem:[#allocation8] sm:$0xff] %v165_v21  ;;  %v263_v23 = vpop.f32.mrb[2].mxu0 }
 0x11a   :  { %207 = vst [vmem:[#allocation8 + $0x20] sm:$0xff] %v185_v22  ;;  %v269_v24 = vpop.f32.mrb[2].mxu1  ;;  %v180_v25 = vadd.f32 %v263_v23, %v229_v14  ;;  %v174_v27 = vpop.f32.mrb[3].mxu0 }
 0x11b   :  { %v200_v26 = vadd.f32 %v269_v24, %v229_v14  ;;  %v194_v28 = vpop.f32.mrb[3].mxu1  ;;  %v175_v29 = vadd.f32 %v229_v14, %v174_v27 }
 0x11c   :  { %v195_v30 = vadd.f32 %v229_v14, %v194_v28  ;;  %206 = vst [vmem:[#allocation8 + $0x18] sm:$0xff] %v180_v25 }
 0x11d   :  { %210 = vst [vmem:[#allocation8 + $0x38] sm:$0xff] %v200_v26  ;;  %205 = vst [vmem:[#allocation8 + $0x10] sm:$0xff] %v175_v29 }
 0x11e   :  { %209 = vst [vmem:[#allocation8 + $0x30] sm:$0xff] %v195_v30 }
 0x11f   :  { %365 = shalt.err (!%p362_p0)
}
 0x120   :  { %s366_s28 = scalar_lea.hbm %s483_s3, 1024 }
 0x121   :  { %p367_p1 = scmp.ne.s32.totalorder %s483_s3, %s366_s28  ;;  %p370_p2 = scmp.lt.u32.totalorder %s366_s28, %s483_s3 }
 0x123   :  { %p372_p3 = pnand %p370_p2, %p367_p1 }
 0x125   :  { %375 = shalt.err (!%p372_p3)
}
 0x126   :  { %222 = dma.vmem_to_hbm [thread:$0]  %s217_s22, 1024, %s483_s3, [#allocation4], %s384_s24, %s384_s24, %s385_s25  }
 0x127   :  { %380 = dma.done.wait [#allocation4], 1024  }
 0x128   :  { %381 = vsyncadd [#allocation4], 4294966272 }
 0x129   :  { %226 = vsyncpa [#allocation3], 1 }
 0x12a   :  { %227 = vsyncpa [#allocation6], 1 }
 0x12b   :  { %228 = vsyncpa [#allocation4], 1 }

</bundles_post_ra>
